<compile_context>
chip_gen: v6e
topology: v6e:2x2x1
jax: 0.10.0
libtpu: 0.0.40
codegen_flags: <defaults>
</compile_context>

<pallas_src>
import functools

import jax
import jax.numpy as jnp
from jax.experimental import pallas as pl
from jax.experimental.pallas import tpu as pltpu

_LANE = 128      # vreg lane width
_SUBLANE = 16    # bf16 sublane packing (also satisfies f32's 8-row alignment)


def _round_up(x, m):
    return ((x + m - 1) // m) * m


def _use_bf16_tanh():
    """bf16 EUP exists on v6e/v7x; keep tanh in f32 on v5e and older."""
    try:
        kind = jax.devices()[0].device_kind.lower()
    except Exception:
        return False
    return ("v6" in kind) or ("v7" in kind)


def _mlp_kernel(x_ref,
                w1_ref, b1_ref,
                w2_ref, b2_ref,
                w3_ref, b3_ref,
                w4_ref, b4_ref,
                w5_ref, b5_ref,
                o_ref,
                *, bf16_tanh):
    """Fused 5-layer MLP: bf16 MXU operands, f32 accumulation, tanh on EUP."""

    def hidden(h, w_ref, b_ref):
        z = jnp.dot(h, w_ref[...], preferred_element_type=jnp.float32)
        z = z + b_ref[...]
        if bf16_tanh:
            # v6e/v7x: bf16 EUP tanh (~2x f32 throughput); result already bf16.
            return jnp.tanh(z.astype(jnp.bfloat16))
        return jnp.tanh(z).astype(jnp.bfloat16)

    # Input stays f32 / true-width in HBM; cast to bf16 here for the MXU.
    h = x_ref[...].astype(jnp.bfloat16)
    h = hidden(h, w1_ref, b1_ref)
    h = hidden(h, w2_ref, b2_ref)
    h = hidden(h, w3_ref, b3_ref)
    h = hidden(h, w4_ref, b4_ref)
    o_ref[...] = (jnp.dot(h, w5_ref[...], preferred_element_type=jnp.float32)
                  + b5_ref[...]).astype(o_ref.dtype)


def prepare_params(params):
    """One-time (init-time) padding + cast of the Linear parameters.

    params: list of (W, b) with W: [in, out] f32, b: [out] or [1, out] f32.
    Returns cached kernel-ready params:
      * weights -> bf16, hidden/out feature axes zero-padded to multiples of 128
        (dim_in is left at its true width),
      * biases  -> f32 [1, padded_out].
    Zero padding is exact: padded units are tanh(0 + 0) = 0 and padded output
    lanes are 0 (sliced away in the wrapper).
    """
    dims = [params[0][0].shape[0]] + [w.shape[1] for (w, _) in params]
    pdims = [dims[0]] + [_round_up(d, _LANE) for d in dims[1:]]

    flat = []
    for idx, (w, b) in enumerate(params):
        pin, pout = pdims[idx], pdims[idx + 1]
        w_p = jnp.zeros((pin, pout), jnp.bfloat16)
        w_p = w_p.at[:w.shape[0], :w.shape[1]].set(w.astype(jnp.bfloat16))
        b2 = jnp.reshape(b, (1, -1)).astype(jnp.float32)
        b_p = jnp.zeros((1, pout), jnp.float32).at[:, :b2.shape[1]].set(b2)
        flat.extend([w_p, b_p])

    return {"flat": tuple(flat), "dims": tuple(dims), "pdims": tuple(pdims)}


def neural_network_forward(x, prepared, *, batch_tile=1024):
    """Forward pass of the 5-layer tanh MLP via a single fused Pallas kernel.

    x: [B, dim_in] float32.  prepared: output of prepare_params().
    Returns [B, dim_out] float32.
    """
    B, dim_in = x.shape
    dims, pdims = prepared["dims"], prepared["pdims"]
    flat_params = prepared["flat"]
    assert dim_in == dims[0], f"x has dim_in={dim_in}, params expect {dims[0]}"
    dim_out, pad_out = dims[-1], pdims[-1]

    x = x.astype(jnp.float32)

    # Batch tiling: one step for small batches; for large batches aim for >=4
    # grid steps (>=2 per v7x TensorCore -> DMA/compute overlap), capped at
    # batch_tile.  No explicit row padding: the trailing partial block is
    # masked by Pallas (row-wise ops only, so garbage rows are never stored).
    b_aligned = _round_up(B, _SUBLANE)
    if b_aligned <= batch_tile:
        tile = b_aligned
    else:
        tile = min(batch_tile, _round_up(pl.cdiv(b_aligned, 4), _SUBLANE))
    grid = (pl.cdiv(B, tile),)

    x_spec = pl.BlockSpec((tile, dim_in), lambda i: (i, 0))
    param_specs = [pl.BlockSpec(p.shape, lambda i: (0, 0)) for p in flat_params]
    out_spec = pl.BlockSpec((tile, pad_out), lambda i: (i, 0))

    flops = 2 * B * sum(pdims[i] * pdims[i + 1] for i in range(len(pdims) - 1))
    transcendentals = B * sum(pdims[1:-1])
    bytes_accessed = (int(x.size) * 4                       # f32 input, true width
                      + B * pad_out * 2                     # bf16 output
                      + sum(int(p.size) * p.dtype.itemsize for p in flat_params))

    kernel = functools.partial(_mlp_kernel, bf16_tanh=_use_bf16_tanh())

    # Only needed if a caller pushes tiles past 1024 (v5e's 16 MiB scoped default).
    vmem_limit = 64 * 1024 * 1024 if tile > 1024 else None

    out = pl.pallas_call(
        kernel,
        out_shape=jax.ShapeDtypeStruct((B, pad_out), jnp.bfloat16),
        grid_spec=pltpu.PrefetchScalarGridSpec(
            num_scalar_prefetch=0,
            grid=grid,
            in_specs=[x_spec] + param_specs,
            out_specs=out_spec,
        ),
        compiler_params=pltpu.CompilerParams(
            dimension_semantics=("parallel",),
            vmem_limit_bytes=vmem_limit),
        cost_estimate=pl.CostEstimate(
            flops=flops,
            transcendentals=transcendentals,
            bytes_accessed=bytes_accessed),
    )(x, *flat_params)

    return out[:, :dim_out].astype(jnp.float32)


def init_params(key, dim_in, dim_out):
    """nn.Linear-default init: U(-1/sqrt(fan_in), 1/sqrt(fan_in)); f32, unpadded."""
    dims = [dim_in, 128, 256, 128, 64, dim_out]
    params = []
    for fan_in, fan_out in zip(dims[:-1], dims[1:]):
        key, kw, kb = jax.random.split(key, 3)
        bound = 1.0 / jnp.sqrt(float(fan_in))
        w = jax.random.uniform(kw, (fan_in, fan_out), jnp.float32,
                               minval=-bound, maxval=bound)
        b = jax.random.uniform(kb, (1, fan_out), jnp.float32,
                               minval=-bound, maxval=bound)
        params.append((w, b))
    return params


def reference_forward(x, params):
    h = x
    for i, (w, b) in enumerate(params):
        h = h @ w + b
        if i < len(params) - 1:
            h = jnp.tanh(h)
    return h


if __name__ == "__main__":
    key = jax.random.PRNGKey(0)
    dim_in, dim_out = 32, 16
    batch = 50  # deliberately not a tile multiple -> exercises the ragged block

    key, kx = jax.random.split(key)
    x = jax.random.normal(kx, (batch, dim_in), jnp.float32)
    params = init_params(key, dim_in, dim_out)

    # One-time param preparation (padding + bf16 cast), hoisted out of forward.
    prepared = prepare_params(params)

    out = neural_network_forward(x, prepared)
    out = jax.block_until_ready(out)

    ref = reference_forward(x, params)
    assert out.shape == (batch, dim_out)
    # bf16 operands + bf16 output storage, f32 accumulation -> loose tolerance.
    max_err = float(jnp.max(jnp.abs(out - ref)))
    assert jnp.allclose(out, ref, atol=5e-2, rtol=5e-2), (
        f"mismatch vs reference, max abs err = {max_err}")

    print("KERNEL_OK")
</pallas_src>

<mosaic_0001>
module attributes {stable_mosaic.version = 11 : i64} {
  func.func @_mlp_kernel(%arg0: i32, %arg1: memref<64x32xf32, #tpu.memory_space<vmem>>, %arg2: memref<32x128xbf16, #tpu.memory_space<vmem>>, %arg3: memref<1x128xf32, #tpu.memory_space<vmem>>, %arg4: memref<128x256xbf16, #tpu.memory_space<vmem>>, %arg5: memref<1x256xf32, #tpu.memory_space<vmem>>, %arg6: memref<256x128xbf16, #tpu.memory_space<vmem>>, %arg7: memref<1x128xf32, #tpu.memory_space<vmem>>, %arg8: memref<128x128xbf16, #tpu.memory_space<vmem>>, %arg9: memref<1x128xf32, #tpu.memory_space<vmem>>, %arg10: memref<128x128xbf16, #tpu.memory_space<vmem>>, %arg11: memref<1x128xf32, #tpu.memory_space<vmem>>, %arg12: memref<64x128xbf16, #tpu.memory_space<vmem>>) attributes {dimension_semantics = [#tpu.dimension_semantics<parallel>], iteration_bounds = array<i64: 1>, scalar_prefetch = 0 : i64, scratch_operands = 0 : i64, tpu.core_type = #tpu.core_type<tc>, window_params = [{transform_indices = @transform_0, window_bounds = array<i64: 64, 32>}, {pipeline_mode = #tpu.pipeline_mode<synchronous>, transform_indices = @transform_1, window_bounds = array<i64: 32, 128>}, {pipeline_mode = #tpu.pipeline_mode<synchronous>, transform_indices = @transform_2, window_bounds = array<i64: 1, 128>}, {pipeline_mode = #tpu.pipeline_mode<synchronous>, transform_indices = @transform_3, window_bounds = array<i64: 128, 256>}, {pipeline_mode = #tpu.pipeline_mode<synchronous>, transform_indices = @transform_4, window_bounds = array<i64: 1, 256>}, {pipeline_mode = #tpu.pipeline_mode<synchronous>, transform_indices = @transform_5, window_bounds = array<i64: 256, 128>}, {pipeline_mode = #tpu.pipeline_mode<synchronous>, transform_indices = @transform_6, window_bounds = array<i64: 1, 128>}, {pipeline_mode = #tpu.pipeline_mode<synchronous>, transform_indices = @transform_7, window_bounds = array<i64: 128, 128>}, {pipeline_mode = #tpu.pipeline_mode<synchronous>, transform_indices = @transform_8, window_bounds = array<i64: 1, 128>}, {pipeline_mode = #tpu.pipeline_mode<synchronous>, transform_indices = @transform_9, window_bounds = array<i64: 128, 128>}, {pipeline_mode = #tpu.pipeline_mode<synchronous>, transform_indices = @transform_10, window_bounds = array<i64: 1, 128>}, {transform_indices = @transform_11, window_bounds = array<i64: 64, 128>}]} {
    %c0 = arith.constant 0 : index
    %c0_0 = arith.constant 0 : index
    %0 = vector.load %arg1[%c0, %c0_0] : memref<64x32xf32, #tpu.memory_space<vmem>>, vector<64x32xf32>
    %1 = arith.truncf %0 : vector<64x32xf32> to vector<64x32xbf16>
    %c0_1 = arith.constant 0 : index
    %c0_2 = arith.constant 0 : index
    %2 = vector.load %arg2[%c0_1, %c0_2] : memref<32x128xbf16, #tpu.memory_space<vmem>>, vector<32x128xbf16>
    %cst = arith.constant dense<0.000000e+00> : vector<64x128xf32>
    %3 = tpu.matmul %1, %2, %cst {dimension_numbers = #tpu.dot_dimension_numbers<[1], [0], [0], [1], [0, 0, 1, 1], [], []>} : vector<64x32xbf16>, vector<32x128xbf16>, vector<64x128xf32> -> vector<64x128xf32>
    %c0_3 = arith.constant 0 : index
    %c0_4 = arith.constant 0 : index
    %4 = vector.load %arg3[%c0_3, %c0_4] : memref<1x128xf32, #tpu.memory_space<vmem>>, vector<1x128xf32>
    %5 = vector.broadcast %4 : vector<1x128xf32> to vector<64x128xf32>
    %6 = arith.addf %3, %5 : vector<64x128xf32>
    %7 = math.tanh %6 : vector<64x128xf32>
    %8 = arith.truncf %7 : vector<64x128xf32> to vector<64x128xbf16>
    %c0_5 = arith.constant 0 : index
    %c0_6 = arith.constant 0 : index
    %9 = vector.load %arg4[%c0_5, %c0_6] : memref<128x256xbf16, #tpu.memory_space<vmem>>, vector<128x256xbf16>
    %cst_7 = arith.constant dense<0.000000e+00> : vector<64x256xf32>
    %10 = tpu.matmul %8, %9, %cst_7 {dimension_numbers = #tpu.dot_dimension_numbers<[1], [0], [0], [1], [0, 0, 1, 1], [], []>} : vector<64x128xbf16>, vector<128x256xbf16>, vector<64x256xf32> -> vector<64x256xf32>
    %c0_8 = arith.constant 0 : index
    %c0_9 = arith.constant 0 : index
    %11 = vector.load %arg5[%c0_8, %c0_9] : memref<1x256xf32, #tpu.memory_space<vmem>>, vector<1x256xf32>
    %12 = vector.broadcast %11 : vector<1x256xf32> to vector<64x256xf32>
    %13 = arith.addf %10, %12 : vector<64x256xf32>
    %14 = math.tanh %13 : vector<64x256xf32>
    %15 = arith.truncf %14 : vector<64x256xf32> to vector<64x256xbf16>
    %c0_10 = arith.constant 0 : index
    %c0_11 = arith.constant 0 : index
    %16 = vector.load %arg6[%c0_10, %c0_11] : memref<256x128xbf16, #tpu.memory_space<vmem>>, vector<256x128xbf16>
    %cst_12 = arith.constant dense<0.000000e+00> : vector<64x128xf32>
    %17 = tpu.matmul %15, %16, %cst_12 {dimension_numbers = #tpu.dot_dimension_numbers<[1], [0], [0], [1], [0, 0, 1, 1], [], []>} : vector<64x256xbf16>, vector<256x128xbf16>, vector<64x128xf32> -> vector<64x128xf32>
    %c0_13 = arith.constant 0 : index
    %c0_14 = arith.constant 0 : index
    %18 = vector.load %arg7[%c0_13, %c0_14] : memref<1x128xf32, #tpu.memory_space<vmem>>, vector<1x128xf32>
    %19 = vector.broadcast %18 : vector<1x128xf32> to vector<64x128xf32>
    %20 = arith.addf %17, %19 : vector<64x128xf32>
    %21 = math.tanh %20 : vector<64x128xf32>
    %22 = arith.truncf %21 : vector<64x128xf32> to vector<64x128xbf16>
    %c0_15 = arith.constant 0 : index
    %c0_16 = arith.constant 0 : index
    %23 = vector.load %arg8[%c0_15, %c0_16] : memref<128x128xbf16, #tpu.memory_space<vmem>>, vector<128x128xbf16>
    %cst_17 = arith.constant dense<0.000000e+00> : vector<64x128xf32>
    %24 = tpu.matmul %22, %23, %cst_17 {dimension_numbers = #tpu.dot_dimension_numbers<[1], [0], [0], [1], [0, 0, 1, 1], [], []>} : vector<64x128xbf16>, vector<128x128xbf16>, vector<64x128xf32> -> vector<64x128xf32>
    %c0_18 = arith.constant 0 : index
    %c0_19 = arith.constant 0 : index
    %25 = vector.load %arg9[%c0_18, %c0_19] : memref<1x128xf32, #tpu.memory_space<vmem>>, vector<1x128xf32>
    %26 = vector.broadcast %25 : vector<1x128xf32> to vector<64x128xf32>
    %27 = arith.addf %24, %26 : vector<64x128xf32>
    %28 = math.tanh %27 : vector<64x128xf32>
    %29 = arith.truncf %28 : vector<64x128xf32> to vector<64x128xbf16>
    %c0_20 = arith.constant 0 : index
    %c0_21 = arith.constant 0 : index
    %30 = vector.load %arg10[%c0_20, %c0_21] : memref<128x128xbf16, #tpu.memory_space<vmem>>, vector<128x128xbf16>
    %cst_22 = arith.constant dense<0.000000e+00> : vector<64x128xf32>
    %31 = tpu.matmul %29, %30, %cst_22 {dimension_numbers = #tpu.dot_dimension_numbers<[1], [0], [0], [1], [0, 0, 1, 1], [], []>} : vector<64x128xbf16>, vector<128x128xbf16>, vector<64x128xf32> -> vector<64x128xf32>
    %c0_23 = arith.constant 0 : index
    %c0_24 = arith.constant 0 : index
    %32 = vector.load %arg11[%c0_23, %c0_24] : memref<1x128xf32, #tpu.memory_space<vmem>>, vector<1x128xf32>
    %33 = vector.broadcast %32 : vector<1x128xf32> to vector<64x128xf32>
    %34 = arith.addf %31, %33 : vector<64x128xf32>
    %35 = arith.truncf %34 : vector<64x128xf32> to vector<64x128xbf16>
    %c0_25 = arith.constant 0 : index
    %c0_26 = arith.constant 0 : index
    %36 = vector.load %arg12[%c0_25, %c0_26] : memref<64x128xbf16, #tpu.memory_space<vmem>>, vector<64x128xbf16>
    tpu.vector_store %arg12[%c0_25, %c0_26], %35 {strides = array<i32>} : memref<64x128xbf16, #tpu.memory_space<vmem>>, vector<64x128xbf16>,
    return
  }
  func.func @transform_0(%arg0: i32) -> (i32, i32) {
    %c0_i32 = arith.constant 0 : i32
    %c0_i32_0 = arith.constant 0 : i32
    return %arg0, %c0_i32 : i32, i32
  }
  func.func @transform_1(%arg0: i32) -> (i32, i32) {
    %c0_i32 = arith.constant 0 : i32
    %c0_i32_0 = arith.constant 0 : i32
    %c0_i32_1 = arith.constant 0 : i32
    return %c0_i32, %c0_i32_0 : i32, i32
  }
  func.func @transform_2(%arg0: i32) -> (i32, i32) {
    %c0_i32 = arith.constant 0 : i32
    %c0_i32_0 = arith.constant 0 : i32
    %c0_i32_1 = arith.constant 0 : i32
    return %c0_i32, %c0_i32_0 : i32, i32
  }
  func.func @transform_3(%arg0: i32) -> (i32, i32) {
    %c0_i32 = arith.constant 0 : i32
    %c0_i32_0 = arith.constant 0 : i32
    %c0_i32_1 = arith.constant 0 : i32
    return %c0_i32, %c0_i32_0 : i32, i32
  }
  func.func @transform_4(%arg0: i32) -> (i32, i32) {
    %c0_i32 = arith.constant 0 : i32
    %c0_i32_0 = arith.constant 0 : i32
    %c0_i32_1 = arith.constant 0 : i32
    return %c0_i32, %c0_i32_0 : i32, i32
  }
  func.func @transform_5(%arg0: i32) -> (i32, i32) {
    %c0_i32 = arith.constant 0 : i32
    %c0_i32_0 = arith.constant 0 : i32
    %c0_i32_1 = arith.constant 0 : i32
    return %c0_i32, %c0_i32_0 : i32, i32
  }
  func.func @transform_6(%arg0: i32) -> (i32, i32) {
    %c0_i32 = arith.constant 0 : i32
    %c0_i32_0 = arith.constant 0 : i32
    %c0_i32_1 = arith.constant 0 : i32
    return %c0_i32, %c0_i32_0 : i32, i32
  }
  func.func @transform_7(%arg0: i32) -> (i32, i32) {
    %c0_i32 = arith.constant 0 : i32
    %c0_i32_0 = arith.constant 0 : i32
    %c0_i32_1 = arith.constant 0 : i32
    return %c0_i32, %c0_i32_0 : i32, i32
  }
  func.func @transform_8(%arg0: i32) -> (i32, i32) {
    %c0_i32 = arith.constant 0 : i32
    %c0_i32_0 = arith.constant 0 : i32
    %c0_i32_1 = arith.constant 0 : i32
    return %c0_i32, %c0_i32_0 : i32, i32
  }
  func.func @transform_9(%arg0: i32) -> (i32, i32) {
    %c0_i32 = arith.constant 0 : i32
    %c0_i32_0 = arith.constant 0 : i32
    %c0_i32_1 = arith.constant 0 : i32
    return %c0_i32, %c0_i32_0 : i32, i32
  }
  func.func @transform_10(%arg0: i32) -> (i32, i32) {
    %c0_i32 = arith.constant 0 : i32
    %c0_i32_0 = arith.constant 0 : i32
    %c0_i32_1 = arith.constant 0 : i32
    return %c0_i32, %c0_i32_0 : i32, i32
  }
  func.func @transform_11(%arg0: i32) -> (i32, i32) {
    %c0_i32 = arith.constant 0 : i32
    %c0_i32_0 = arith.constant 0 : i32
    return %arg0, %c0_i32 : i32, i32
  }
}

</mosaic_0001>

<bundles_post_ra>
// kernel: tpu_custom_call.1
= control target key start
LH: loop header
LB: loop body
LE: loop exit
PB: predicated region body
PF: predicated region fallthrough
CT: control target
= control target key end

     0   :  { %16 = vsyncpa [#allocation3], 0  ;;  %s1588_s0 = inlined_call_operand.vmem [shape: f32[50,32], index: 0, kind: input, shape index: {}]   ;;  %s1589_s1 = inlined_call_operand.vmem [shape: bf16[32,128], index: 1, kind: input, shape index: {}]   ;;  %s1590_s2 = inlined_call_operand.vmem [shape: f32[1,128], index: 2, kind: input, shape index: {}]   ;;  %s1591_s3 = inlined_call_operand.hbm [shape: bf16[128,256], index: 3, kind: input, shape index: {}]   ;;  %s1592_s4 = inlined_call_operand.vmem [shape: f32[1,256], index: 4, kind: input, shape index: {}]   ;;  %s1593_s5 = inlined_call_operand.hbm [shape: bf16[256,128], index: 5, kind: input, shape index: {}]   ;;  %s1594_s6 = inlined_call_operand.vmem [shape: f32[1,128], index: 6, kind: input, shape index: {}]   ;;  %s1595_s7 = inlined_call_operand.vmem [shape: bf16[128,128], index: 7, kind: input, shape index: {}]   ;;  %s1596_s8 = inlined_call_operand.vmem [shape: f32[1,128], index: 8, kind: input, shape index: {}]   ;;  %s1597_s9 = inlined_call_operand.hbm [shape: bf16[128,128], index: 9, kind: input, shape index: {}]   ;;  %s1598_s10 = inlined_call_operand.vmem [shape: f32[1,128], index: 10, kind: input, shape index: {}]   ;;  %s1599_s11 = inlined_call_operand.hbm [shape: bf16[50,128], index: 11, kind: output, shape index: {}]  }
   0x1   :  { %17 = vsyncpa [#allocation6], 0 }
   0x2   :  { %18 = vsyncpa [#allocation4], 0  ;;  %s1425_s17 = smov [#allocation5]  }
   0x3   :  { %s44_s18 = sshll.u32 %s1425_s17, 4  ;;  %s45_s18 = int_to_ptr.vmem [resolvable:$true] %s44_s18 }
   0x4   :  { %s1347_s19 = scalar_lea.vmem %s45_s18, 2048  ;;  %p1352_p1 = scmp.lt.s32.totalorder %s45_s18, %s45_s18 }
   0x5   :  { %p1348_p0 = scmp.ne.s32.totalorder %s45_s18, %s1347_s19  ;;  %p1353_p2 = scmp.lt.s32.totalorder %s1347_s19, %s1347_s19 }
   0x7   :  { %p1354_p3 = por %p1353_p2, %p1352_p1 }
   0x9   :  { %p1355_p4 = pnand %p1354_p3, %p1348_p0 }
   0xb   :  { %1358 = shalt.err (!%p1355_p4)
}
   0xc   :  { %s1426_s20 = smov 64   ;;  %s1427_s21 = smov 4  }
   0xd   :  { %50 = dma.hbm_to_vmem [thread:$0]  %s1593_s5, 2048, %s45_s18, [#allocation6], %s1426_s20, %s1426_s20, %s1427_s21  }
   0xe   :  { %s1428_s24 = smov [#allocation2]  }
   0xf   :  { %s30_s25 = sshll.u32 %s1428_s24, 4  ;;  %s31_s25 = int_to_ptr.vmem [resolvable:$true] %s30_s25 }
  0x10   :  { %s1367_s26 = scalar_lea.vmem %s31_s25, 2048  ;;  %p1372_p6 = scmp.lt.s32.totalorder %s31_s25, %s31_s25 }
  0x11   :  { %p1368_p5 = scmp.ne.s32.totalorder %s31_s25, %s1367_s26  ;;  %p1373_p7 = scmp.lt.s32.totalorder %s1367_s26, %s1367_s26 }
  0x13   :  { %p1374_p8 = por %p1373_p7, %p1372_p6 }
  0x15   :  { %p1375_p9 = pnand %p1374_p8, %p1368_p5 }
  0x17   :  { %1378 = shalt.err (!%p1375_p9)
}
  0x18   :  { %s1429_s27 = smov 128   ;;  %s1430_s28 = smov 8  }
  0x19   :  { %36 = dma.hbm_to_vmem [thread:$0]  %s1591_s3, 2048, %s31_s25, [#allocation3], %s1429_s27, %s1429_s27, %s1430_s28  }
  0x1a   :  { %s1431_s12 = smov [#allocation7]  }
  0x1b   :  { %s62_s13 = sshll.u32 %s1431_s12, 4  ;;  %s63_s13 = int_to_ptr.vmem [resolvable:$true] %s62_s13 }
  0x1c   :  { %s1387_s5 = scalar_lea.vmem %s63_s13, 1024  ;;  %p1392_p11 = scmp.lt.s32.totalorder %s63_s13, %s63_s13 }
  0x1d   :  { %p1388_p10 = scmp.ne.s32.totalorder %s63_s13, %s1387_s5  ;;  %p1393_p12 = scmp.lt.s32.totalorder %s1387_s5, %s1387_s5 }
  0x1f   :  { %p1394_p13 = por %p1393_p12, %p1392_p11 }
  0x21   :  { %p1395_p0 = pnand %p1394_p13, %p1388_p10 }
  0x23   :  { %1398 = shalt.err (!%p1395_p0)
}
  0x24   :  { %68 = dma.hbm_to_vmem [thread:$0]  %s1597_s9, 1024, %s63_s13, [#allocation6], %s1426_s20, %s1426_s20, %s1427_s21  }
  0x25   :  { %1419 = dma.done.wait [#allocation3], 2048  }
  0x26   :  { %1420 = vsyncadd [#allocation3], 4294965248 }
  0x27   :  { %1421 = dma.done.wait [#allocation6], 3072  }
  0x28   :  { %1422 = vsyncadd [#allocation6], 4294964224  ;;  %v1201_v0 = vld [vmem:[%s1589_s1 + $0x8] sm:$0xff]   ;;  %v1202_v1 = vld [vmem:[%s1589_s1] sm:$0xff]   ;;  %vm116_vm0 = vcmask 261120   ;;  %v1432_v30 = vmov 0  }
  0x29   :  { %1132 = vmatprep.subr.bf16.mxu0 %v1201_v0  ;;  %v81_v2 = vld [vmem:[%s1588_s0] sm:$0xff]  ;;  %v82_v3 = vld [vmem:[%s1588_s0 + $0x8] sm:$0xff]  ;;  %v83_v5 = vld [vmem:[%s1588_s0 + $0x10] sm:$0xff]  ;;  %346 = vmatprep.mubr.bf16.mxu1 %v1432_v30 }
  0x2a   :  { %1133 = vmatpush3.bf16.msra.mxu0 %v1201_v0  ;;  %v89_v4 = vpack.c.bf16 %v82_v3, %v81_v2  ;;  %v84_v6 = vld [vmem:[%s1588_s0 + $0x18] sm:$0xff]  ;;  %v85_v7 = vld [vmem:[%s1588_s0 + $0x20] sm:$0xff]  ;;  %v86_v8 = vld [vmem:[%s1588_s0 + $0x28] sm:$0xff] }
  0x2b   :  { %1134 = vmatprep.subr.bf16.mxu0 %v1202_v1  ;;  %v1203_v9 = vld [vmem:[#allocation2 + $0x74] ss:$8 sps:$4 sm:$0xff]   ;;  %v1205_v10 = vld [vmem:[#allocation2 + $0x70] ss:$8 sps:$4 sm:$0xff]   ;;  %v90_v11 = vpack.c.bf16 %v84_v6, %v83_v5  ;;  %v1206_v12 = vld [vmem:[#allocation2 + $0x64] ss:$8 sps:$4 sm:$0xff]   ;;  %v91_v13 = vpack.c.bf16 %v86_v8, %v85_v7 }
  0x2c   :  { %1136 = vmatprep.mubr.msk.bf16.mxu0 %vm116_vm0, %v89_v4  ;;  %314 = vmatprep.subr.bf16.mxu1 %v1203_v9  ;;  %v1208_v14 = vld [vmem:[#allocation2 + $0x60] ss:$8 sps:$4 sm:$0xff]   ;;  %v87_v15 = vld [vmem:[%s1588_s0 + $0x30] sm:$0xff]  ;;  %v88_v16 = vld [vmem:[%s1588_s0 + $0x38] sm:$0xff] }
  0x2d   :  { %315 = vmatpush1.bf16.msra.mxu1 %v1205_v10  ;;  %v92_v17 = vpack.c.bf16 %v88_v16, %v87_v15  ;;  %v1209_v18 = vld [vmem:[#allocation2 + $0x54] ss:$8 sps:$4 sm:$0xff]   ;;  %v1211_v19 = vld [vmem:[#allocation2 + $0x50] ss:$8 sps:$4 sm:$0xff]   ;;  %v1212_v20 = vld [vmem:[#allocation2 + $0x44] ss:$8 sps:$4 sm:$0xff]  }
  0x2e   :  { %1135 = vmatpush3.bf16.msra.mxu0 %v1202_v1  ;;  %316 = vmatprep.subr.bf16.mxu1 %v1206_v12  ;;  %v1214_v21 = vld [vmem:[#allocation2 + $0x40] ss:$8 sps:$4 sm:$0xff]   ;;  %v1215_v22 = vld [vmem:[#allocation2 + $0x34] ss:$8 sps:$4 sm:$0xff]   ;;  %v1217_v23 = vld [vmem:[#allocation2 + $0x30] ss:$8 sps:$4 sm:$0xff]   ;;  %v224_v12 = vlaneseq }
  0x2f   :  { %v1218_v24 = vld [vmem:[#allocation2 + $0x24] ss:$8 sps:$4 sm:$0xff]   ;;  %v1220_v25 = vld [vmem:[#allocation2 + $0x20] ss:$8 sps:$4 sm:$0xff]   ;;  %v1221_v26 = vld [vmem:[#allocation2 + $0x14] ss:$8 sps:$4 sm:$0xff]  }
  0x30   :  { %v1223_v27 = vld [vmem:[#allocation2 + $0x10] ss:$8 sps:$4 sm:$0xff]   ;;  %v1224_v28 = vld [vmem:[#allocation2 + $0x4] ss:$8 sps:$4 sm:$0xff]   ;;  %v1226_v29 = vld [vmem:[#allocation2] ss:$8 sps:$4 sm:$0xff]  }
  0x31   :  { %1137 = vmatmul.mubr.msk.bf16.vlgmr.msra.gmra.mxu0 %vm116_vm0, %v90_v11  ;;  %317 = vmatpush1.bf16.msra.mxu1 %v1208_v14  ;;  %v1227_v31 = vld [vmem:[#allocation5 + $0x78] sm:$0xff]   ;;  %v1229_v33 = vld [vmem:[#allocation5 + $0x70] sm:$0xff]   ;;  %v965_v37 = vld [vmem:[%s1590_s2] ss:$0 sm:$0xff] }
  0x32   :  { %1140 = vmatprep.mubr.msk.bf16.mxu0 %vm116_vm0, %v91_v13  ;;  %318 = vmatprep.subr.bf16.mxu1 %v1209_v18  ;;  %v1228_v32 = vld [vmem:[#allocation5 + $0x38] sm:$0xff]   ;;  %v1230_v34 = vld [vmem:[#allocation5 + $0x30] sm:$0xff]   ;;  %v1231_v0 = vld [vmem:[#allocation5 + $0x68] sm:$0xff]   ;;  %v225_v13 = vshrl.u32 %v224_v12, 7 }
  0x33   :  { %1068 = vmatprep.subr.bf16.mxu0 %v1227_v31  ;;  %v1232_v1 = vld [vmem:[#allocation5 + $0x28] sm:$0xff]   ;;  %v1233_v2 = vld [vmem:[#allocation5 + $0x60] sm:$0xff]   ;;  %v1235_v4 = vld [vmem:[#allocation5 + $0x58] sm:$0xff]  }
  0x34   :  { %1069 = vmatpush3.bf16.msra.mxu0 %v1228_v32  ;;  %v1234_v3 = vld [vmem:[#allocation5 + $0x20] sm:$0xff]   ;;  %v1236_v5 = vld [vmem:[#allocation5 + $0x18] sm:$0xff]   ;;  %v1237_v6 = vld [vmem:[#allocation5 + $0x50] sm:$0xff]   ;;  %v230_v14 = vsub.s32 1, %v225_v13  ;;  %v226_v16 = vsub.s32 0, %v225_v13 }
  0x35   :  { %319 = vmatpush1.bf16.msra.mxu1 %v1211_v19  ;;  %1070 = vmatprep.subr.bf16.mxu0 %v1229_v33  ;;  %v1238_v7 = vld [vmem:[#allocation5 + $0x10] sm:$0xff]   ;;  %v1239_v8 = vld [vmem:[#allocation5 + $0x48] sm:$0xff]   ;;  %v1241_v10 = vld [vmem:[#allocation5 + $0x40] sm:$0xff]  }
  0x36   :  { %320 = vmatprep.subr.bf16.mxu1 %v1212_v20  ;;  %v1240_v9 = vld [vmem:[#allocation5 + $0x8] sm:$0xff]   ;;  %v1242_v11 = vld [vmem:[#allocation5] sm:$0xff]   ;;  %v1244_v12 = vld [vmem:[%s1595_s7 + $0x30] sm:$0xff]  }
  0x37   :  { %v222_v15 = vld [vmem:[%s1592_s4] sm:$0x3]  ;;  %v1245_v13 = vld [vmem:[%s1595_s7 + $0x28] sm:$0xff]  }
  0x38   :  { %1071 = vmatpush3.bf16.msra.mxu0 %v1230_v34  ;;  %v227_v19 = vrot.slane %v222_v15, %v226_v16  ;;  %v1248_v16 = vld [vmem:[%s1595_s7 + $0x10] sm:$0xff]  }
  0x39   :  { %1141 = vmatmul.mubr.msk.bf16.gmra.mxu0 %vm116_vm0, %v92_v17  ;;  %321 = vmatpush1.bf16.msra.mxu1 %v1214_v21  ;;  %v231_v17 = vrot.slane %v222_v15, %v230_v14  ;;  %v1246_v14 = vld [vmem:[%s1595_s7 + $0x20] sm:$0xff]   ;;  %v1247_v15 = vld [vmem:[%s1595_s7 + $0x18] sm:$0xff]  }
  0x3a   :  { %322 = vmatprep.subr.bf16.mxu1 %v1215_v22  ;;  %1072 = vmatprep.subr.bf16.mxu0 %v1231_v0 }
  0x3c   :  { %1073 = vmatpush3.bf16.msra.mxu0 %v1232_v1 }
  0x3d   :  { %323 = vmatpush1.bf16.msra.mxu1 %v1217_v23  ;;  %1074 = vmatprep.subr.bf16.mxu0 %v1233_v2 }
  0x3e   :  { %324 = vmatprep.subr.bf16.mxu1 %v1218_v24 }
  0x40   :  { %1075 = vmatpush3.bf16.msra.mxu0 %v1234_v3 }
  0x41   :  { %325 = vmatpush1.bf16.msra.mxu1 %v1220_v25  ;;  %1076 = vmatprep.subr.bf16.mxu0 %v1235_v4 }
  0x42   :  { %326 = vmatprep.subr.bf16.mxu1 %v1221_v26 }
  0x44   :  { %1077 = vmatpush3.bf16.msra.mxu0 %v1236_v5 }
  0x45   :  { %327 = vmatpush1.bf16.msra.mxu1 %v1223_v27  ;;  %1078 = vmatprep.subr.bf16.mxu0 %v1237_v6 }
  0x46   :  { %328 = vmatprep.subr.bf16.mxu1 %v1224_v28 }
  0x48   :  { %1079 = vmatpush3.bf16.msra.mxu0 %v1238_v7 }
  0x49   :  { %329 = vmatpush1.bf16.msra.mxu1 %v1226_v29  ;;  %1080 = vmatprep.subr.bf16.mxu0 %v1239_v8 }
  0x4c   :  { %1081 = vmatpush3.bf16.msra.mxu0 %v1240_v9 }
  0x4d   :  { %1082 = vmatprep.subr.bf16.mxu0 %v1241_v10 }
  0x50   :  { %1083 = vmatpush3.bf16.msra.mxu0 %v1242_v11  ;;  %v1243_v11 = vld [vmem:[%s1595_s7 + $0x38] sm:$0xff]  }
  0x51   :  { %1144 = vmatprep.subr.bf16.mxu1 %v1243_v11 }
  0xf1   :  { %v1138_v35 = vpop.f32.mrf.mxu0 }
  0xf2   :  { %v172_v46 = vadd.f32 %v1138_v35, %v965_v37 }
  0xf3   :  { %v163_v36 = vpop.f32.mrf.mxu0 }
  0xf4   :  { %v164_v38 = vadd.f32 %v965_v37, %v163_v36 }
  0xf5   :  { %v1139_v39 = vpop.f32.mrf.mxu0 }
  0xf6   :  { %1259 = vtanh.f32 %v164_v38  ;;  %v175_v44 = vadd.f32 %v1139_v39, %v965_v37 }
  0xf7   :  { %v166_v40 = vpop.f32.mrf.mxu0 }
  0xf8   :  { %v167_v41 = vadd.f32 %v965_v37, %v166_v40 }
  0xf9   :  { %v1142_v42 = vpop.f32.mrf.mxu0 }
  0xfa   :  { %1261 = vtanh.f32 %v167_v41  ;;  %v188_v53 = vadd.f32 %v1142_v42, %v965_v37 }
  0xfb   :  { %v179_v43 = vpop.f32.mrf.mxu0  ;;  %1263 = vtanh.f32 %v175_v44 }
  0xfc   :  { %1265 = vtanh.f32 %v172_v46  ;;  %v180_v48 = vadd.f32 %v965_v37, %v179_v43 }
  0xfd   :  { %v1143_v45 = vpop.f32.mrf.mxu0 }
  0xfe   :  { %1267 = vtanh.f32 %v180_v48  ;;  %v191_v54 = vadd.f32 %v1143_v45, %v965_v37 }
  0xff   :  { %v182_v47 = vpop.f32.mrf.mxu0 }
 0x100   :  { %v183_v49 = vadd.f32 %v965_v37, %v182_v47 }
 0x102   :  { %1269 = vtanh.f32 %v183_v49 }
 0x103   :  { %v1260_v50 = vpop.eup %1259  ;;  %1271 = vtanh.f32 %v188_v53 }
 0x104   :  { %1273 = vtanh.f32 %v191_v54 }
 0x107   :  { %v1262_v51 = vpop.eup %1261 }
 0x108   :  { %v202_v52 = vpack.c.bf16 %v1262_v51, %v1260_v50  ;;  %v1264_v55 = vpop.eup %1263 }
 0x109   :  { %v1266_v56 = vpop.eup %1265 }
 0x10a   :  { %347 = vmatmul.mubr.bf16.vlgmr.msra.gmra.mxu1 %v202_v52  ;;  %v203_v57 = vpack.c.bf16 %v1264_v55, %v1266_v56 }
 0x10b   :  { %356 = vmatprep.mubr.bf16.mxu1 %v1432_v30  ;;  %v1268_v58 = vpop.eup %1267  ;;  %1145 = vmatpush3.bf16.msra.mxu1 %v1243_v11 }
 0x10c   :  { %1146 = vmatprep.subr.bf16.mxu1 %v1244_v12 }
 0x10f   :  { %v1270_v59 = vpop.eup %1269  ;;  %1147 = vmatpush3.bf16.msra.mxu1 %v1244_v12 }
 0x110   :  { %v204_v60 = vpack.c.bf16 %v1270_v59, %v1268_v58  ;;  %v1272_v61 = vpop.eup %1271  ;;  %1148 = vmatprep.subr.bf16.mxu1 %v1245_v13 }
 0x111   :  { %v1274_v62 = vpop.eup %1273 }
 0x112   :  { %357 = vmatmul.mubr.bf16.gmra.mxu1 %v203_v57  ;;  %v205_v63 = vpack.c.bf16 %v1274_v62, %v1272_v61 }
 0x113   :  { %366 = vmatprep.mubr.bf16.mxu1 %v1432_v30  ;;  %1149 = vmatpush3.bf16.msra.mxu1 %v1245_v13 }
 0x114   :  { %1150 = vmatprep.subr.bf16.mxu1 %v1246_v14 }
 0x117   :  { %1151 = vmatpush3.bf16.msra.mxu1 %v1246_v14 }
 0x118   :  { %1152 = vmatprep.subr.bf16.mxu1 %v1247_v15 }
 0x11a   :  { %367 = vmatmul.mubr.bf16.gmra.mxu1 %v204_v60 }
 0x11b   :  { %376 = vmatprep.mubr.bf16.mxu1 %v1432_v30  ;;  %1153 = vmatpush3.bf16.msra.mxu1 %v1247_v15 }
 0x11c   :  { %1154 = vmatprep.subr.bf16.mxu1 %v1248_v16 }
 0x11f   :  { %1155 = vmatpush3.bf16.msra.mxu1 %v1248_v16 }
 0x122   :  { %377 = vmatmul.mubr.bf16.gmra.mxu1 %v205_v63 }
 0x1ca   :  { %v348_v18 = vpop.f32.mrf.mxu1 }
 0x1cb   :  { %v349_v24 = vadd.f32 %v348_v18, %v227_v19  ;;  %v1250_v18 = vld [vmem:[%s1595_s7] sm:$0xff]  }
 0x1cc   :  { %v350_v20 = vpop.f32.mrf.mxu1 }
 0x1cd   :  { %v351_v21 = vadd.f32 %v350_v20, %v231_v17  ;;  %v1252_v20 = vld [vmem:[#allocation7 + $0x30] sm:$0xff]  }
 0x1ce   :  { %v352_v22 = vpop.f32.mrf.mxu1 }
 0x1cf   :  { %v353_v23 = vadd.f32 %v352_v22, %v227_v19  ;;  %1275 = vtanh.f32 %v351_v21 }
 0x1d0   :  { %v354_v25 = vpop.f32.mrf.mxu1 }
 0x1d1   :  { %v355_v26 = vadd.f32 %v354_v25, %v231_v17  ;;  %1277 = vtanh.f32 %v353_v23  ;;  %v988_v23 = vld [vmem:[%s1594_s6] ss:$0 sm:$0xff] }
 0x1d2   :  { %v358_v27 = vpop.f32.mrf.mxu1 }
 0x1d3   :  { %1279 = vtanh.f32 %v355_v26  ;;  %v359_v32 = vadd.f32 %v358_v27, %v227_v19 }
 0x1d4   :  { %1281 = vtanh.f32 %v349_v24  ;;  %v360_v28 = vpop.f32.mrf.mxu1 }
 0x1d5   :  { %v361_v29 = vadd.f32 %v360_v28, %v231_v17 }
 0x1d6   :  { %v362_v30 = vpop.f32.mrf.mxu1 }
 0x1d7   :  { %v363_v31 = vadd.f32 %v362_v30, %v227_v19  ;;  %1283 = vtanh.f32 %v361_v29 }
 0x1d8   :  { %v364_v33 = vpop.f32.mrf.mxu1 }
 0x1d9   :  { %v365_v34 = vadd.f32 %v364_v33, %v231_v17  ;;  %1285 = vtanh.f32 %v363_v31 }
 0x1da   :  { %v368_v35 = vpop.f32.mrf.mxu1 }
 0x1db   :  { %1287 = vtanh.f32 %v365_v34  ;;  %v369_v43 = vadd.f32 %v368_v35, %v227_v19 }
 0x1dc   :  { %1289 = vtanh.f32 %v359_v32  ;;  %v370_v36 = vpop.f32.mrf.mxu1  ;;  %v1276_v38 = vpop.eup %1275 }
 0x1dd   :  { %v371_v37 = vadd.f32 %v370_v36, %v231_v17 }
 0x1de   :  { %v372_v39 = vpop.f32.mrf.mxu1  ;;  %v1278_v40 = vpop.eup %1277 }
 0x1df   :  { %v373_v41 = vadd.f32 %v372_v39, %v227_v19  ;;  %1291 = vtanh.f32 %v371_v37 }
 0x1e0   :  { %v1280_v42 = vpop.eup %1279  ;;  %v374_v44 = vpop.f32.mrf.mxu1 }
 0x1e1   :  { %v1282_v45 = vpop.eup %1281  ;;  %v375_v46 = vadd.f32 %v374_v44, %v231_v17  ;;  %v404_v47 = vpack.c.bf16 %v1280_v42, %v1276_v38  ;;  %1293 = vtanh.f32 %v373_v41 }
 0x1e2   :  { %v378_v48 = vpop.f32.mrf.mxu1  ;;  %v403_v49 = vpack.c.bf16 %v1278_v40, %v1282_v45 }
 0x1e3   :  { %1295 = vtanh.f32 %v375_v46  ;;  %578 = vmatprep.mubr.bf16.mxu0 %v404_v47  ;;  %v379_v57 = vadd.f32 %v378_v48, %v227_v19 }
 0x1e4   :  { %1297 = vtanh.f32 %v369_v43  ;;  %v380_v50 = vpop.f32.mrf.mxu1  ;;  %579 = vmatmul.mubr.bf16.vlgmr.msra.gmra.mxu0 %v403_v49  ;;  %v1284_v52 = vpop.eup %1283 }
 0x1e5   :  { %v381_v51 = vadd.f32 %v380_v50, %v231_v17 }
 0x1e6   :  { %v382_v53 = vpop.f32.mrf.mxu1  ;;  %v1286_v54 = vpop.eup %1285 }
 0x1e7   :  { %v383_v55 = vadd.f32 %v382_v53, %v227_v19  ;;  %1299 = vtanh.f32 %v381_v51  ;;  %v1251_v19 = vld [vmem:[#allocation7 + $0x38] sm:$0xff]  }
 0x1e8   :  { %v1288_v56 = vpop.eup %1287  ;;  %v384_v58 = vpop.f32.mrf.mxu1  ;;  %1168 = vmatprep.subr.bf16.mxu0 %v1251_v19 }
 0x1e9   :  { %v1290_v59 = vpop.eup %1289  ;;  %v385_v60 = vadd.f32 %v384_v58, %v231_v17  ;;  %v406_v61 = vpack.c.bf16 %v1288_v56, %v1284_v52  ;;  %1301 = vtanh.f32 %v383_v55  ;;  %v1249_v17 = vld [vmem:[%s1595_s7 + $0x8] sm:$0xff]   ;;  %1169 = vmatpush3.bf16.msra.mxu0 %v1251_v19 }
 0x1ea   :  { %v405_v62 = vpack.c.bf16 %v1286_v54, %v1290_v59  ;;  %1156 = vmatprep.subr.bf16.mxu1 %v1249_v17  ;;  %1170 = vmatprep.subr.bf16.mxu0 %v1252_v20 }
 0x1eb   :  { %1303 = vtanh.f32 %v385_v60  ;;  %586 = vmatprep.mubr.bf16.mxu0 %v406_v61  ;;  %1157 = vmatpush3.bf16.msra.mxu1 %v1249_v17 }
 0x1ec   :  { %1305 = vtanh.f32 %v379_v57  ;;  %587 = vmatmul.mubr.bf16.gmra.mxu0 %v405_v62  ;;  %v1292_v63 = vpop.eup %1291  ;;  %1158 = vmatprep.subr.bf16.mxu1 %v1250_v18 }
 0x1ed   :  { %1171 = vmatpush3.bf16.msra.mxu0 %v1252_v20 }
 0x1ee   :  { %v1294_v0 = vpop.eup %1293 }
 0x1ef   :  { %1159 = vmatpush3.bf16.msra.mxu1 %v1250_v18 }
 0x1f0   :  { %v1296_v1 = vpop.eup %1295 }
 0x1f1   :  { %v1298_v2 = vpop.eup %1297  ;;  %v408_v3 = vpack.c.bf16 %v1296_v1, %v1292_v63 }
 0x1f2   :  { %v407_v4 = vpack.c.bf16 %v1294_v0, %v1298_v2  ;;  %v1253_v2 = vld [vmem:[#allocation7 + $0x28] sm:$0xff]  }
 0x1f3   :  { %594 = vmatprep.mubr.bf16.mxu0 %v408_v3  ;;  %1172 = vmatprep.subr.bf16.mxu0 %v1253_v2  ;;  %v1254_v3 = vld [vmem:[#allocation7 + $0x20] sm:$0xff]  }
 0x1f4   :  { %595 = vmatmul.mubr.bf16.gmra.mxu0 %v407_v4  ;;  %v1300_v5 = vpop.eup %1299  ;;  %v1255_v4 = vld [vmem:[#allocation7 + $0x18] sm:$0xff]  }
 0x1f5   :  { %1173 = vmatpush3.bf16.msra.mxu0 %v1253_v2 }
 0x1f6   :  { %v1302_v6 = vpop.eup %1301  ;;  %1174 = vmatprep.subr.bf16.mxu0 %v1254_v3 }
 0x1f8   :  { %v1304_v7 = vpop.eup %1303 }
 0x1f9   :  { %v1306_v8 = vpop.eup %1305  ;;  %v410_v9 = vpack.c.bf16 %v1304_v7, %v1300_v5  ;;  %1175 = vmatpush3.bf16.msra.mxu0 %v1254_v3  ;;  %v1256_v5 = vld [vmem:[#allocation7 + $0x10] sm:$0xff]   ;;  %v1258_v7 = vld [vmem:[#allocation7] sm:$0xff]  }
 0x1fa   :  { %v409_v10 = vpack.c.bf16 %v1302_v6, %v1306_v8  ;;  %1176 = vmatprep.subr.bf16.mxu0 %v1255_v4  ;;  %v1257_v6 = vld [vmem:[#allocation7 + $0x8] sm:$0xff]  }
 0x1fb   :  { %602 = vmatprep.mubr.bf16.mxu0 %v410_v9  ;;  %v1005_v9 = vld [vmem:[%s1596_s8] ss:$0 sm:$0xff] }
 0x1fc   :  { %603 = vmatmul.mubr.bf16.gmra.mxu0 %v409_v10 }
 0x1fd   :  { %1177 = vmatpush3.bf16.msra.mxu0 %v1255_v4 }
 0x1fe   :  { %1178 = vmatprep.subr.bf16.mxu0 %v1256_v5 }
 0x201   :  { %1179 = vmatpush3.bf16.msra.mxu0 %v1256_v5 }
 0x202   :  { %1180 = vmatprep.subr.bf16.mxu0 %v1257_v6 }
 0x205   :  { %1181 = vmatpush3.bf16.msra.mxu0 %v1257_v6 }
 0x206   :  { %1182 = vmatprep.subr.bf16.mxu0 %v1258_v7 }
 0x209   :  { %1183 = vmatpush3.bf16.msra.mxu0 %v1258_v7 }
 0x2a4   :  { %v1084_v21 = vpop.f32.mrf.mxu0 }
 0x2a6   :  { %v1085_v22 = vpop.f32.mrf.mxu0 }
 0x2a7   :  { %v1086_v24 = vadd.f32 %v1085_v22, %v1084_v21 }
 0x2a8   :  { %v1087_v25 = vpop.f32.mrf.mxu0 }
 0x2a9   :  { %v581_v26 = vadd.f32 %v1086_v24, %v988_v23 }
 0x2aa   :  { %v1088_v27 = vpop.f32.mrf.mxu0 }
 0x2ab   :  { %v1089_v28 = vadd.f32 %v1088_v27, %v1087_v25  ;;  %1307 = vtanh.f32 %v581_v26 }
 0x2ac   :  { %v1090_v29 = vpop.f32.mrf.mxu0 }
 0x2ad   :  { %v584_v30 = vadd.f32 %v1089_v28, %v988_v23 }
 0x2ae   :  { %v1091_v31 = vpop.f32.mrf.mxu0 }
 0x2af   :  { %1309 = vtanh.f32 %v584_v30  ;;  %v1092_v32 = vadd.f32 %v1091_v31, %v1090_v29 }
 0x2b0   :  { %v1093_v33 = vpop.f32.mrf.mxu0 }
 0x2b1   :  { %v589_v34 = vadd.f32 %v1092_v32, %v988_v23 }
 0x2b2   :  { %v1094_v35 = vpop.f32.mrf.mxu0 }
 0x2b3   :  { %v1095_v36 = vadd.f32 %v1094_v35, %v1093_v33  ;;  %1311 = vtanh.f32 %v589_v34 }
 0x2b4   :  { %v1096_v37 = vpop.f32.mrf.mxu0 }
 0x2b5   :  { %v592_v38 = vadd.f32 %v1095_v36, %v988_v23 }
 0x2b6   :  { %v1097_v39 = vpop.f32.mrf.mxu0 }
 0x2b7   :  { %1313 = vtanh.f32 %v592_v38  ;;  %v1098_v40 = vadd.f32 %v1097_v39, %v1096_v37  ;;  %v1014_v38 = vld [vmem:[%s1598_s10] ss:$0 sm:$0xff] }
 0x2b8   :  { %v1099_v41 = vpop.f32.mrf.mxu0  ;;  %v1308_v44 = vpop.eup %1307 }
 0x2b9   :  { %v597_v42 = vadd.f32 %v1098_v40, %v988_v23 }
 0x2ba   :  { %v1100_v43 = vpop.f32.mrf.mxu0 }
 0x2bb   :  { %v1101_v45 = vadd.f32 %v1100_v43, %v1099_v41  ;;  %1315 = vtanh.f32 %v597_v42 }
 0x2bc   :  { %v1310_v46 = vpop.eup %1309  ;;  %v1102_v47 = vpop.f32.mrf.mxu0 }
 0x2bd   :  { %v600_v48 = vadd.f32 %v1101_v45, %v988_v23  ;;  %v619_v49 = vpack.c.bf16 %v1310_v46, %v1308_v44 }
 0x2be   :  { %v1103_v50 = vpop.f32.mrf.mxu0 }
 0x2bf   :  { %1317 = vtanh.f32 %v600_v48  ;;  %v1104_v51 = vadd.f32 %v1103_v50, %v1102_v47  ;;  %1160 = vmatprep.mubr.bf16.mxu1 %v619_v49 }
 0x2c0   :  { %v1105_v52 = vpop.f32.mrf.mxu0  ;;  %v1312_v55 = vpop.eup %1311 }
 0x2c1   :  { %v605_v53 = vadd.f32 %v1104_v51, %v988_v23 }
 0x2c2   :  { %v1106_v54 = vpop.f32.mrf.mxu0 }
 0x2c3   :  { %v1107_v56 = vadd.f32 %v1106_v54, %v1105_v52  ;;  %1319 = vtanh.f32 %v605_v53 }
 0x2c4   :  { %v1314_v57 = vpop.eup %1313 }
 0x2c5   :  { %v608_v58 = vadd.f32 %v1107_v56, %v988_v23  ;;  %v620_v59 = vpack.c.bf16 %v1314_v57, %v1312_v55 }
 0x2c7   :  { %1321 = vtanh.f32 %v608_v58  ;;  %1161 = vmatmul.mubr.bf16.vlgmr.msra.gmra.mxu1 %v620_v59 }
 0x2c8   :  { %v1316_v60 = vpop.eup %1315 }
 0x2cc   :  { %v1318_v61 = vpop.eup %1317 }
 0x2cd   :  { %v621_v62 = vpack.c.bf16 %v1318_v61, %v1316_v60 }
 0x2cf   :  { %1164 = vmatprep.mubr.bf16.mxu1 %v621_v62 }
 0x2d0   :  { %v1320_v63 = vpop.eup %1319 }
 0x2d4   :  { %v1322_v0 = vpop.eup %1321 }
 0x2d5   :  { %v622_v1 = vpack.c.bf16 %v1322_v0, %v1320_v63 }
 0x2d7   :  { %1165 = vmatmul.mubr.bf16.gmra.mxu1 %v622_v1 }
 0x387   :  { %v1162_v8 = vpop.f32.mrf.mxu1 }
 0x388   :  { %v737_v14 = vadd.f32 %v1162_v8, %v1005_v9 }
 0x389   :  { %v728_v10 = vpop.f32.mrf.mxu1 }
 0x38a   :  { %v729_v11 = vadd.f32 %v1005_v9, %v728_v10 }
 0x38b   :  { %v1163_v12 = vpop.f32.mrf.mxu1 }
 0x38c   :  { %v740_v13 = vadd.f32 %v1163_v12, %v1005_v9  ;;  %1323 = vtanh.f32 %v729_v11 }
 0x38d   :  { %v731_v15 = vpop.f32.mrf.mxu1 }
 0x38e   :  { %v732_v16 = vadd.f32 %v1005_v9, %v731_v15  ;;  %1325 = vtanh.f32 %v740_v13 }
 0x390   :  { %1327 = vtanh.f32 %v732_v16 }
 0x391   :  { %1329 = vtanh.f32 %v737_v14 }
 0x397   :  { %v1166_v17 = vpop.f32.mrf.mxu1 }
 0x398   :  { %v753_v25 = vadd.f32 %v1166_v17, %v1005_v9 }
 0x399   :  { %v744_v18 = vpop.f32.mrf.mxu1  ;;  %v1324_v20 = vpop.eup %1323 }
 0x39a   :  { %v745_v19 = vadd.f32 %v1005_v9, %v744_v18 }
 0x39b   :  { %v1167_v21 = vpop.f32.mrf.mxu1  ;;  %v1326_v22 = vpop.eup %1325 }
 0x39c   :  { %v756_v23 = vadd.f32 %v1167_v21, %v1005_v9  ;;  %1331 = vtanh.f32 %v745_v19 }
 0x39d   :  { %v1328_v24 = vpop.eup %1327  ;;  %v747_v26 = vpop.f32.mrf.mxu1 }
 0x39e   :  { %v1330_v27 = vpop.eup %1329  ;;  %v748_v28 = vadd.f32 %v1005_v9, %v747_v26  ;;  %v767_v29 = vpack.c.bf16 %v1328_v24, %v1324_v20  ;;  %1333 = vtanh.f32 %v756_v23 }
 0x39f   :  { %v768_v30 = vpack.c.bf16 %v1326_v22, %v1330_v27 }
 0x3a0   :  { %1335 = vtanh.f32 %v748_v28  ;;  %1184 = vmatprep.mubr.bf16.mxu0 %v767_v29 }
 0x3a1   :  { %1337 = vtanh.f32 %v753_v25  ;;  %1185 = vmatmul.mubr.bf16.vlgmr.msra.gmra.mxu0 %v768_v30 }
 0x3a9   :  { %v1332_v31 = vpop.eup %1331 }
 0x3ab   :  { %v1334_v32 = vpop.eup %1333 }
 0x3ad   :  { %v1336_v33 = vpop.eup %1335 }
 0x3ae   :  { %v1338_v34 = vpop.eup %1337  ;;  %v769_v35 = vpack.c.bf16 %v1336_v33, %v1332_v31 }
 0x3af   :  { %v770_v36 = vpack.c.bf16 %v1334_v32, %v1338_v34 }
 0x3b0   :  { %1188 = vmatprep.mubr.bf16.mxu0 %v769_v35 }
 0x3b1   :  { %1189 = vmatmul.mubr.bf16.gmra.mxu0 %v770_v36 }
 0x461   :  { %v1186_v37 = vpop.f32.mrf.mxu0 }
 0x462   :  { %v885_v41 = vadd.f32 %v1186_v37, %v1014_v38 }
 0x463   :  { %v876_v39 = vpop.f32.mrf.mxu0 }
 0x464   :  { %v877_v44 = vadd.f32 %v1014_v38, %v876_v39 }
 0x465   :  { %v1187_v40 = vpop.f32.mrf.mxu0 }
 0x466   :  { %v888_v42 = vadd.f32 %v1187_v40, %v1014_v38 }
 0x467   :  { %v879_v43 = vpop.f32.mrf.mxu0 }
 0x468   :  { %v1047_v45 = vpack.c.bf16 %v888_v42, %v885_v41  ;;  %v880_v46 = vadd.f32 %v1014_v38, %v879_v43 }
 0x46a   :  { %1059 = vst [vmem:[#allocation8 + $0x8] sm:$0xff] %v1047_v45   ;;  %v1042_v47 = vpack.c.bf16 %v880_v46, %v877_v44 }
 0x46c   :  { %1043 = vst [vmem:[#allocation8] sm:$0xff] %v1042_v47  }
 0x471   :  { %v1190_v48 = vpop.f32.mrf.mxu0 }
 0x472   :  { %v901_v51 = vadd.f32 %v1190_v48, %v1014_v38 }
 0x473   :  { %v892_v49 = vpop.f32.mrf.mxu0 }
 0x474   :  { %v893_v54 = vadd.f32 %v1014_v38, %v892_v49 }
 0x475   :  { %v1191_v50 = vpop.f32.mrf.mxu0 }
 0x476   :  { %v904_v52 = vadd.f32 %v1191_v50, %v1014_v38 }
 0x477   :  { %v895_v53 = vpop.f32.mrf.mxu0 }
 0x478   :  { %v1057_v55 = vpack.c.bf16 %v904_v52, %v901_v51  ;;  %v896_v56 = vadd.f32 %v1014_v38, %v895_v53 }
 0x47a   :  { %1061 = vst [vmem:[#allocation8 + $0x18] sm:$0xff] %v1057_v55   ;;  %v1052_v57 = vpack.c.bf16 %v896_v56, %v893_v54 }
 0x47c   :  { %1060 = vst [vmem:[#allocation8 + $0x10] sm:$0xff] %v1052_v57  }
 0x47d   :  { %951 = vsyncadd [#allocation4], 64  ;;  %s1433_s10 = smov [#allocation8]  }
 0x47e   :  { %s952_s14 = sshll.u32 %s1433_s10, 4  ;;  %s953_s14 = int_to_ptr.vmem [resolvable:$true] %s952_s14 }
 0x47f   :  { %s1399_s0 = scalar_lea.vmem %s953_s14, 448  ;;  %s1403_s15 = scalar_lea.vmem %s953_s14, 512 }
 0x480   :  { %p1400_p1 = scmp.ne.s32.totalorder %s953_s14, %s1399_s0  ;;  %p1404_p2 = scmp.lt.s32.totalorder %s953_s14, %s953_s14 }
 0x481   :  { %p1405_p3 = scmp.lt.s32.totalorder %s1403_s15, %s1399_s0 }
 0x483   :  { %p1406_p4 = por %p1405_p3, %p1404_p2 }
 0x485   :  { %p1407_p5 = pnand %p1406_p4, %p1400_p1 }
 0x487   :  { %1410 = shalt.err (!%p1407_p5)
}
 0x488   :  { %958 = dma.vmem_to_hbm [thread:$0]  %s953_s14, 448, %s1599_s11, [#allocation4], %s1426_s20, %s1426_s20, %s1427_s21  }
 0x489   :  { %1423 = dma.done.wait [#allocation4], 512  }
 0x48a   :  { %1424 = vsyncadd [#allocation4], 4294966784 }
 0x48b   :  { %962 = vsyncpa [#allocation3], 1 }
 0x48c   :  { %963 = vsyncpa [#allocation6], 1 }
 0x48d   :  { %964 = vsyncpa [#allocation4], 1 }

</bundles_post_ra>
